<compile_context>
chip_gen: v5e
topology: v5e:2x2
jax: 0.10.0
libtpu: 0.0.40
codegen_flags: <defaults>
</compile_context>

<pallas_src>
import functools

import jax
import jax.numpy as jnp
from jax import lax
from jax.experimental import pallas as pl
from jax.experimental.pallas import tpu as pltpu

# Hyperparameters from ASL_Multilabel.__init__ defaults (uniform across classes).
GAMMA_NEG = 4.0   # gamma_neg = [4] * num_classes
GAMMA_POS = 1.0   # gamma_pos = [1] * num_classes
CLIP = 0.05
EPS = 1e-08
LANES = 128
ALIGN = 32        # int8 sublane tile -> keep row counts multiples of 32
PAD_LOGIT = 30.0  # sigmoid(30) == 1.0 exactly in f32 -> padded loss is exactly 0

# TODO(synk): the binary-label specialization (single log + select) and the
# uniform-gamma fast path (gamma_pos=1, gamma_neg=4) are exact only for hard
# {0,1} targets and the module's default gamma vectors; soft targets or
# per-class gammas would need the general pow/log formulation.


def _asl_kernel(x_ref, y_ref, out_ref, *, strip, num_strips):
    """One (tr, 128) lane-dense block -> one (1, 8, 128) partial sum."""

    def body(s, acc):
        r0 = pl.multiple_of(s * strip, strip)
        x = x_ref[pl.ds(r0, strip), :].astype(jnp.float32)
        pos = y_ref[pl.ds(r0, strip), :].astype(jnp.int32) != 0

        xs_pos = jax.nn.sigmoid(x)                          # EUP
        # clip > 0: xs_neg = min(1 - sigmoid(x) + clip, 1)
        xs_neg = jnp.minimum(1.0 - xs_pos + CLIP, 1.0)

        # Single transcendental log via the binary-label select.
        base = jnp.where(pos, xs_pos, xs_neg)
        logp = jnp.log(jnp.maximum(base, EPS))              # EUP

        # Asymmetric focusing weight:
        #   y == 1: (1 - xs_pos)^gamma_pos = wb        (gamma_pos = 1)
        #   y == 0: (1 - xs_neg)^gamma_neg = (wb^2)^2  (gamma_neg = 4)
        wb = 1.0 - base
        wb2 = wb * wb
        w = jnp.where(pos, wb, wb2 * wb2)

        loss = logp * w
        # Partial reduce on the VPU only: (strip, 128) -> (8, 128) vreg adds.
        return acc + loss.reshape(strip // 8, 8, LANES).sum(axis=0)

    acc = lax.fori_loop(0, num_strips, body,
                        jnp.zeros((8, LANES), jnp.float32))
    out_ref[...] = acc.reshape(1, 8, LANES)


def asl_multilabel_loss(inputs, targets, *, tile_rows=4096):
    """Returns total_loss / num_classes, matching ASL_Multilabel.forward."""
    assert inputs.shape == targets.shape and inputs.ndim == 2
    assert tile_rows >= ALIGN and tile_rows % ALIGN == 0
    B, C = inputs.shape
    n = B * C

    # Keep logits in their native dtype (cast to f32 in-kernel); labels -> int8.
    xf = inputs.reshape(-1)
    yf = targets.reshape(-1).astype(jnp.int8)

    rows_needed = pl.cdiv(n, LANES)
    rows_padded = pl.cdiv(rows_needed, ALIGN) * ALIGN

    tr = min(tile_rows, rows_padded)
    # v7x megacore: if the whole problem fits in a single oversized tile but is
    # bigger than one tile's worth of "ideal" work, split into >=2 grid steps.
    if tr < rows_padded < 2 * tr:
        tr = pl.cdiv(pl.cdiv(rows_padded, 2), ALIGN) * ALIGN
    strip = tr if tr <= 512 else 512
    tr = pl.cdiv(tr, strip) * strip          # tile is whole strips
    num_strips = tr // strip

    num_tiles = pl.cdiv(rows_padded, tr)
    total_rows = num_tiles * tr
    pad = total_rows * LANES - n
    if pad:
        # Padded elements contribute exactly 0 (log(1)=0, weight 1-xs_pos=0),
        # so the kernel needs no mask.  When n is already aligned we skip the
        # pad pass entirely and the reshape below is metadata-only.
        xf = jnp.pad(xf, (0, pad), constant_values=PAD_LOGIT)
        yf = jnp.pad(yf, (0, pad), constant_values=1)
    x2 = xf.reshape(total_rows, LANES)
    y2 = yf.reshape(total_rows, LANES)

    kernel = functools.partial(_asl_kernel, strip=strip, num_strips=num_strips)

    partials = pl.pallas_call(
        kernel,
        out_shape=jax.ShapeDtypeStruct((num_tiles, 8, LANES), jnp.float32),
        grid_spec=pltpu.PrefetchScalarGridSpec(
            num_scalar_prefetch=0,
            grid=(num_tiles,),
            in_specs=[
                pl.BlockSpec((tr, LANES), lambda i: (i, 0)),
                pl.BlockSpec((tr, LANES), lambda i: (i, 0)),
            ],
            out_specs=pl.BlockSpec((1, 8, LANES), lambda i: (i, 0, 0)),
        ),
        compiler_params=pltpu.CompilerParams(
            dimension_semantics=("parallel",)),   # independent tiles -> both TCs
    )(x2, y2)

    # Tiny final reduction + sign/normalization in the wrapper.
    return -(jnp.sum(partials) / jnp.float32(n))


def _reference(inputs, targets):
    """Pure-JAX mirror of the PyTorch per-class forward, for sanity checking."""
    x = inputs.astype(jnp.float32)
    y = targets.astype(jnp.float32)
    xs_pos = jax.nn.sigmoid(x)
    xs_neg = jnp.minimum(1.0 - xs_pos + CLIP, 1.0)
    loss = y * jnp.log(jnp.maximum(xs_pos, EPS)) \
        + (1.0 - y) * jnp.log(jnp.maximum(xs_neg, EPS))
    base = 1.0 - xs_pos * y - xs_neg * (1.0 - y)
    w = jnp.power(base, GAMMA_POS * y + GAMMA_NEG * (1.0 - y))
    loss = loss * w
    num_classes = x.shape[1]
    total = 0.0
    for idx in range(num_classes):                   # mirrors the module's loop
        total = total + (-(loss[:, idx]).mean())
    return total / num_classes


if __name__ == "__main__":
    key = jax.random.PRNGKey(0)
    kx, ky = jax.random.split(key)

    B, C = 64, 5  # (batch, num_classes=5) as implied by the module defaults
    inputs = jax.random.normal(kx, (B, C), dtype=jnp.float32) * 2.0
    targets = (jax.random.uniform(ky, (B, C)) > 0.7).astype(jnp.float32)

    out = jax.block_until_ready(asl_multilabel_loss(inputs, targets))
    ref = jax.block_until_ready(_reference(inputs, targets))
    assert jnp.allclose(out, ref, rtol=1e-5, atol=1e-6), (out, ref)

    print("KERNEL_OK")
</pallas_src>

<mosaic_0001>
module attributes {stable_mosaic.version = 11 : i64} {
  func.func @_asl_kernel(%arg0: i32, %arg1: memref<32x128xf32, #tpu.memory_space<vmem>>, %arg2: memref<32x128xi8, #tpu.memory_space<vmem>>, %arg3: memref<1x8x128xf32, #tpu.memory_space<vmem>>) attributes {dimension_semantics = [#tpu.dimension_semantics<parallel>], iteration_bounds = array<i64: 1>, scalar_prefetch = 0 : i64, scratch_operands = 0 : i64, tpu.core_type = #tpu.core_type<tc>, window_params = [{transform_indices = @transform_0, window_bounds = array<i64: 32, 128>}, {transform_indices = @transform_1, window_bounds = array<i64: 32, 128>}, {transform_indices = @transform_2, window_bounds = array<i64: 1, 8, 128>}]} {
    %cst = arith.constant 0.000000e+00 : f32
    %0 = vector.broadcast %cst : f32 to vector<8x128xf32>
    %c0_i32 = arith.constant 0 : i32
    %c32_i32 = arith.constant 32 : i32
    %1 = arith.muli %c0_i32, %c32_i32 : i32
    %2 = tpu.assume_multiple %1, 32 : i32
    %3 = arith.index_cast %2 : i32 to index
    %c0 = arith.constant 0 : index
    %4 = vector.load %arg1[%3, %c0] : memref<32x128xf32, #tpu.memory_space<vmem>>, vector<32x128xf32>
    %5 = arith.index_cast %2 : i32 to index
    %c0_0 = arith.constant 0 : index
    %6 = vector.load %arg2[%5, %c0_0] : memref<32x128xi8, #tpu.memory_space<vmem>>, vector<32x128xi8>
    %7 = arith.extsi %6 : vector<32x128xi8> to vector<32x128xi32>
    %c0_i32_1 = arith.constant 0 : i32
    %8 = vector.broadcast %c0_i32_1 : i32 to vector<32x128xi32>
    %9 = arith.cmpi ne, %7, %8 : vector<32x128xi32>
    %10 = arith.negf %4 : vector<32x128xf32>
    %11 = math.exp %10 : vector<32x128xf32>
    %cst_2 = arith.constant 1.000000e+00 : f32
    %12 = vector.broadcast %cst_2 : f32 to vector<32x128xf32>
    %13 = arith.addf %12, %11 : vector<32x128xf32>
    %14 = arith.divf %12, %13 : vector<32x128xf32>
    %cst_3 = arith.constant 1.000000e+00 : f32
    %15 = vector.broadcast %cst_3 : f32 to vector<32x128xf32>
    %16 = arith.subf %15, %14 : vector<32x128xf32>
    %cst_4 = arith.constant 5.000000e-02 : f32
    %17 = vector.broadcast %cst_4 : f32 to vector<32x128xf32>
    %18 = arith.addf %16, %17 : vector<32x128xf32>
    %cst_5 = arith.constant 1.000000e+00 : f32
    %19 = vector.broadcast %cst_5 : f32 to vector<32x128xf32>
    %20 = arith.minimumf %18, %19 : vector<32x128xf32>
    %21 = arith.select %9, %14, %20 : vector<32x128xi1>, vector<32x128xf32>
    %cst_6 = arith.constant 9.99999993E-9 : f32
    %22 = vector.broadcast %cst_6 : f32 to vector<32x128xf32>
    %23 = arith.maximumf %21, %22 : vector<32x128xf32>
    %24 = math.log %23 : vector<32x128xf32>
    %cst_7 = arith.constant 1.000000e+00 : f32
    %25 = vector.broadcast %cst_7 : f32 to vector<32x128xf32>
    %26 = arith.subf %25, %21 : vector<32x128xf32>
    %27 = arith.mulf %26, %26 : vector<32x128xf32>
    %28 = arith.mulf %27, %27 : vector<32x128xf32>
    %29 = arith.select %9, %26, %28 : vector<32x128xi1>, vector<32x128xf32>
    %30 = arith.mulf %24, %29 : vector<32x128xf32>
    %31 = vector.shape_cast %30 : vector<32x128xf32> to vector<4x8x128xf32>
    %cst_8 = arith.constant dense<0.000000e+00> : vector<8x128xf32>
    %32 = vector.multi_reduction <add>, %31, %cst_8 [0] : vector<4x8x128xf32> to vector<8x128xf32>
    %33 = arith.addf %0, %32 : vector<8x128xf32>
    %c1_i32 = arith.constant 1 : i32
    %34 = vector.shape_cast %33 : vector<8x128xf32> to vector<1x8x128xf32>
    %c0_9 = arith.constant 0 : index
    %c0_10 = arith.constant 0 : index
    %c0_11 = arith.constant 0 : index
    %35 = vector.load %arg3[%c0_9, %c0_10, %c0_11] : memref<1x8x128xf32, #tpu.memory_space<vmem>>, vector<1x8x128xf32>
    tpu.vector_store %arg3[%c0_9, %c0_10, %c0_11], %34 {strides = array<i32>} : memref<1x8x128xf32, #tpu.memory_space<vmem>>, vector<1x8x128xf32>,
    return
  }
  func.func @transform_0(%arg0: i32) -> (i32, i32) {
    %c0_i32 = arith.constant 0 : i32
    %c0_i32_0 = arith.constant 0 : i32
    return %arg0, %c0_i32 : i32, i32
  }
  func.func @transform_1(%arg0: i32) -> (i32, i32) {
    %c0_i32 = arith.constant 0 : i32
    %c0_i32_0 = arith.constant 0 : i32
    return %arg0, %c0_i32 : i32, i32
  }
  func.func @transform_2(%arg0: i32) -> (i32, i32, i32) {
    %c0_i32 = arith.constant 0 : i32
    %c0_i32_0 = arith.constant 0 : i32
    %c0_i32_1 = arith.constant 0 : i32
    return %arg0, %c0_i32, %c0_i32_0 : i32, i32, i32
  }
}

</mosaic_0001>

<bundles_post_ra>
// kernel: tpu_custom_call.1
= control target key start
LH: loop header
LB: loop body
LE: loop exit
PB: predicated region body
PF: predicated region fallthrough
CT: control target
= control target key end

     0   :  { %7 = vsyncpa [#allocation3], 0  ;;  %s414_s0 = inlined_call_operand.hbm [shape: f32[32,128], index: 0, kind: input, shape index: {}]   ;;  %s415_s1 = inlined_call_operand.hbm [shape: s8[32,128], index: 1, kind: input, shape index: {}]   ;;  %s416_s2 = inlined_call_operand.hbm [shape: f32[1,8,128], index: 2, kind: output, shape index: {}]  }
   0x1   :  { %8 = vsyncpa [#allocation6], 0 }
   0x2   :  { %9 = vsyncpa [#allocation4], 0  ;;  %s14_s11 = sshll.u32 %s414_s0, 4  ;;  %s313_s12 = smov [#allocation2]   ;;  %s15_s11 = int_to_ptr.hbm [resolvable:$true] %s14_s11 }
   0x3   :  { %s16_s13 = sshll.u32 %s313_s12, 4  ;;  %s28_s16 = sshll.u32 %s415_s1, 4  ;;  %s17_s13 = int_to_ptr.vmem [resolvable:$true] %s16_s13  ;;  %s29_s16 = int_to_ptr.hbm [resolvable:$true] %s28_s16 }
   0x4   :  { %s314_s17 = smov 128   ;;  %s315_s18 = smov 8  }
   0x5   :  { %22 = dma.hbm_to_vmem [thread:$0]  %s15_s11, 512, %s17_s13, [#allocation3], %s314_s17, %s314_s17, %s315_s18  }
   0x6   :  { %s316_s19 = smov [#allocation5]  }
   0x7   :  { %s30_s20 = sshll.u32 %s316_s19, 4  ;;  %s31_s20 = int_to_ptr.vmem [resolvable:$true] %s30_s20 }
   0x8   :  { %33 = dma.hbm_to_vmem [thread:$0]  %s29_s16, 128, %s31_s20, [#allocation6]  }
   0x9   :  { %307 = dma.done.wait [#allocation3], 512  }
   0xa   :  { %308 = vsyncadd [#allocation3], 4294966784 }
   0xb   :  { %309 = dma.done.wait [#allocation6], 128  }
   0xc   :  { %310 = vsyncadd [#allocation6], 4294967168  ;;  %v42_v0 = vld [vmem:[#allocation2] sm:$0xff]  ;;  %v43_v1 = vld [vmem:[#allocation2 + $0x8] sm:$0xff]  ;;  %s317_s0 = smov [#allocation7]   ;;  %s191_s23 = sshll.u32 %s416_s2, 4  ;;  %s192_s23 = int_to_ptr.hbm [resolvable:$true] %s191_s23 }
   0xd   :  { %v44_v2 = vld [vmem:[#allocation2 + $0x10] sm:$0xff]  ;;  %v45_v3 = vld [vmem:[#allocation2 + $0x18] sm:$0xff]  ;;  %v202_v4 = vmul.f32 -1.442695, %v42_v0  ;;  %v203_v5 = vmul.f32 -1.442695, %v43_v1 }
   0xe   :  { %v204_v6 = vmul.f32 -1.442695, %v44_v2  ;;  %v205_v7 = vmul.f32 -1.442695, %v45_v3  ;;  %v46_v32 = vld [vmem:[#allocation5] sm:$0xff]  ;;  %s189_s1 = sshll.u32 %s317_s0, 4  ;;  %s190_s1 = int_to_ptr.vmem [resolvable:$true] %s189_s1 }
   0xf   :  { %211 = vpow2.f32 %v202_v4  ;;  %v47_v43 = vunpack.c.0.s8 %v46_v32  ;;  %v48_v60 = vunpack.c.1.s8 %v46_v32  ;;  %v49_v61 = vunpack.c.2.s8 %v46_v32 }
  0x10   :  { %213 = vpow2.f32 %v203_v5  ;;  %v50_v4 = vunpack.c.3.s8 %v46_v32 }
  0x11   :  { %215 = vpow2.f32 %v204_v6 }
  0x12   :  { %217 = vpow2.f32 %v205_v7 }
  0x15   :  { %v212_v8 = vpop.eup %211 }
  0x16   :  { %v67_v9 = vadd.f32 1.0, %v212_v8  ;;  %v214_v10 = vpop.eup %213 }
  0x17   :  { %v216_v11 = vpop.eup %215  ;;  %v68_v12 = vadd.f32 1.0, %v214_v10 }
  0x18   :  { %219 = vrcp.f32 %v67_v9  ;;  %v218_v13 = vpop.eup %217  ;;  %v69_v14 = vadd.f32 1.0, %v216_v11  ;;  %v80_v16 = vand.u32 2147483647, %v67_v9  ;;  %v82_v17 = vand.u32 2147483648, %v67_v9 }
  0x19   :  { %v70_v15 = vadd.f32 1.0, %v218_v13  ;;  %221 = vrcp.f32 %v68_v12  ;;  %vm76_vm0 = vweird.f32 %v67_v9  ;;  %vm91_vm2 = vweird.f32 %v68_v12 }
  0x1a   :  { %223 = vrcp.f32 %v69_v14  ;;  %vm339_vm1 = vcmp.eq.f32.partialorder %v80_v16, 8.507059e+37  ;;  %v83_v22 = vor.u32 1.1754944e-38, %v82_v17  ;;  %v95_v23 = vand.u32 2147483647, %v68_v12 }
  0x1b   :  { %225 = vrcp.f32 %v70_v15  ;;  %v97_v24 = vand.u32 2147483648, %v68_v12  ;;  %vm106_vm4 = vweird.f32 %v69_v14  ;;  %v110_v30 = vand.u32 2147483647, %v69_v14 }
  0x1c   :  { %v112_v31 = vand.u32 2147483648, %v69_v14  ;;  %vm121_vm5 = vweird.f32 %v70_v15  ;;  %v125_v38 = vand.u32 2147483647, %v70_v15  ;;  %v127_v39 = vand.u32 2147483648, %v70_v15 }
  0x1d   :  { %vm353_vm11 = vcmp.eq.f32.partialorder %v95_v23, 8.507059e+37  ;;  %v98_v46 = vor.u32 1.1754944e-38, %v97_v24  ;;  %vm111_vm13 = vcmp.eq.f32.partialorder %v110_v30, 8.507059e+37 }
  0x1e   :  { %v220_v18 = vpop.eup %219  ;;  %v113_v51 = vor.u32 1.1754944e-38, %v112_v31  ;;  %v128_v56 = vor.u32 1.1754944e-38, %v127_v39  ;;  %vm126_vm15 = vcmp.eq.f32.partialorder %v125_v38, 8.507059e+37 }
  0x1f   :  { %v72_v19 = vmul.f32 %v220_v18, %v67_v9  ;;  %v222_v21 = vpop.eup %221  ;;  %vm77_vm3 = vweird.f32 %v220_v18 }
  0x20   :  { %v224_v25 = vpop.eup %223  ;;  %v87_v27 = vmul.f32 %v222_v21, %v68_v12  ;;  %vm92_vm6 = vweird.f32 %v222_v21  ;;  %vm344_vm7 = vmor %vm76_vm0, %vm77_vm3  ;;  %vm379_vm0 = vcmp.ne.s32.totalorder %v47_v43, 0  ;;  %vm393_vm3 = vcmp.ne.s32.totalorder %v50_v4, 0 }
  0x21   :  { %v73_v26 = vsub.f32 1.0, %v72_v19  ;;  %v226_v28 = vpop.eup %225  ;;  %v102_v29 = vmul.f32 %v224_v25, %v69_v14  ;;  %vm107_vm8 = vweird.f32 %v224_v25  ;;  %vm349_vm10 = vmor %vm91_vm2, %vm92_vm6  ;;  %vm387_vm2 = vcmp.ne.s32.totalorder %v49_v61, 0 }
  0x22   :  { %v88_v34 = vsub.f32 1.0, %v87_v27  ;;  %v117_v35 = vmul.f32 %v226_v28, %v70_v15  ;;  %vm122_vm9 = vweird.f32 %v226_v28  ;;  %vm360_vm12 = vmor %vm106_vm4, %vm107_vm8 }
  0x23   :  { %v74_v33 = vmul.f32 %v220_v18, %v73_v26  ;;  %v103_v37 = vsub.f32 1.0, %v102_v29  ;;  %vm367_vm14 = vmor %vm121_vm5, %vm122_vm9 }
  0x24   :  { %v89_v41 = vmul.f32 %v222_v21, %v88_v34  ;;  %v118_v42 = vsub.f32 1.0, %v117_v35 }
  0x25   :  { %v75_v40 = vadd.f32 %v220_v18, %v74_v33  ;;  %v104_v47 = vmul.f32 %v224_v25, %v103_v37 }
  0x26   :  { %v90_v49 = vadd.f32 %v222_v21, %v89_v41  ;;  %v119_v52 = vmul.f32 %v226_v28, %v118_v42 }
  0x27   :  { %v79_v48 = vsel %vm344_vm7, %v220_v18, %v75_v40  ;;  %v105_v54 = vadd.f32 %v224_v25, %v104_v47 }
  0x28   :  { %v84_v53 = vsel %vm339_vm1, %v83_v22, %v79_v48  ;;  %v94_v57 = vsel %vm349_vm10, %v222_v21, %v90_v49  ;;  %v120_v58 = vadd.f32 %v226_v28, %v119_v52  ;;  %vm383_vm1 = vcmp.ne.s32.totalorder %v48_v60, 0 }
  0x29   :  { %v131_v59 = vsub.f32 1.0, %v84_v53  ;;  %v99_v62 = vsel %vm353_vm11, %v98_v46, %v94_v57  ;;  %v109_v63 = vsel %vm360_vm12, %v224_v25, %v105_v54 }
  0x2a   :  { %v114_v0 = vsel %vm111_vm13, %v113_v51, %v109_v63  ;;  %v124_v1 = vsel %vm367_vm14, %v226_v28, %v120_v58  ;;  %v132_v2 = vsub.f32 1.0, %v99_v62 }
  0x2b   :  { %v135_v3 = vadd.f32 0.05, %v131_v59  ;;  %v129_v6 = vsel %vm126_vm15, %v128_v56, %v124_v1  ;;  %v133_v7 = vsub.f32 1.0, %v114_v0 }
  0x2c   :  { %v134_v8 = vsub.f32 1.0, %v129_v6  ;;  %v136_v9 = vadd.f32 0.05, %v132_v2 }
  0x2d   :  { %v139_v10 = vmin.f32 %v135_v3, 1.0  ;;  %v137_v12 = vadd.f32 0.05, %v133_v7 }
  0x2e   :  { %v138_v14 = vadd.f32 0.05, %v134_v8  ;;  %v140_v15 = vmin.f32 %v136_v9, 1.0 }
  0x2f   :  { %v143_v16 = vsel %vm379_vm0, %v84_v53, %v139_v10  ;;  %v141_v18 = vmin.f32 %v137_v12, 1.0 }
  0x30   :  { %v147_v19 = vmax.f32 %v143_v16, 1e-08  ;;  %v159_v20 = vsub.f32 1.0, %v143_v16  ;;  %v142_v21 = vmin.f32 %v138_v14, 1.0  ;;  %v144_v22 = vsel %vm383_vm1, %v99_v62, %v140_v15 }
  0x31   :  { %v145_v23 = vsel %vm387_vm2, %v114_v0, %v141_v18  ;;  %v148_v24 = vmax.f32 %v144_v22, 1e-08  ;;  %v160_v25 = vsub.f32 1.0, %v144_v22 }
  0x32   :  { %227 = vlog2.f32 %v147_v19  ;;  %v146_v26 = vsel %vm393_vm3, %v129_v6, %v142_v21  ;;  %v149_v27 = vmax.f32 %v145_v23, 1e-08  ;;  %v161_v28 = vsub.f32 1.0, %v145_v23 }
  0x33   :  { %v163_v29 = vmul.f32 %v159_v20, %v159_v20  ;;  %v150_v30 = vmax.f32 %v146_v26, 1e-08  ;;  %229 = vlog2.f32 %v148_v24  ;;  %v162_v31 = vsub.f32 1.0, %v146_v26 }
  0x34   :  { %v164_v32 = vmul.f32 %v160_v25, %v160_v25  ;;  %231 = vlog2.f32 %v149_v27  ;;  %v165_v33 = vmul.f32 %v161_v28, %v161_v28 }
  0x35   :  { %v167_v34 = vmul.f32 %v163_v29, %v163_v29  ;;  %233 = vlog2.f32 %v150_v30  ;;  %v166_v35 = vmul.f32 %v162_v31, %v162_v31 }
  0x36   :  { %v168_v36 = vmul.f32 %v164_v32, %v164_v32  ;;  %v169_v37 = vmul.f32 %v165_v33, %v165_v33 }
  0x37   :  { %v170_v39 = vmul.f32 %v166_v35, %v166_v35  ;;  %v171_v40 = vsel %vm379_vm0, %v159_v20, %v167_v34 }
  0x38   :  { %v228_v38 = vpop.eup %227  ;;  %v172_v43 = vsel %vm383_vm1, %v160_v25, %v168_v36  ;;  %v173_v46 = vsel %vm387_vm2, %v161_v28, %v169_v37 }
  0x39   :  { %v152_v41 = vmul.f32 0.6931472, %v228_v38  ;;  %v230_v42 = vpop.eup %229  ;;  %v174_v50 = vsel %vm393_vm3, %v162_v31, %v170_v39 }
  0x3a   :  { %v232_v44 = vpop.eup %231  ;;  %v154_v45 = vmul.f32 0.6931472, %v230_v42 }
  0x3b   :  { %v175_v47 = vmul.f32 %v171_v40, %v152_v41  ;;  %v234_v48 = vpop.eup %233  ;;  %v156_v49 = vmul.f32 0.6931472, %v232_v44 }
  0x3c   :  { %v158_v51 = vmul.f32 0.6931472, %v234_v48  ;;  %v176_v52 = vmul.f32 %v172_v43, %v154_v45 }
  0x3d   :  { %v177_v53 = vmul.f32 %v173_v46, %v156_v49 }
  0x3e   :  { %v178_v54 = vmul.f32 %v174_v50, %v158_v51  ;;  %v179_v55 = vadd.f32 %v176_v52, %v175_v47 }
  0x40   :  { %v180_v56 = vadd.f32 %v179_v55, %v177_v53 }
  0x42   :  { %v181_v57 = vadd.f32 %v180_v56, %v178_v54 }
  0x44   :  { %183 = vst [vmem:[#allocation7] sm:$0xff] %v181_v57 }
  0x45   :  { %194 = dma.vmem_to_hbm [thread:$0]  %s190_s1, 128, %s192_s23, [#allocation4]  }
  0x46   :  { %311 = dma.done.wait [#allocation4], 128  }
  0x47   :  { %312 = vsyncadd [#allocation4], 4294967168 }
  0x48   :  { %199 = vsyncpa [#allocation3], 1 }
  0x49   :  { %200 = vsyncpa [#allocation6], 1 }
  0x4a   :  { %201 = vsyncpa [#allocation4], 1 }

</bundles_post_ra>
